<compile_context>
chip_gen: v6e
topology: v6e:2x2x1
jax: 0.10.0
libtpu: 0.0.40
codegen_flags: <defaults>
</compile_context>

<pallas_src>
import jax
import jax.numpy as jnp
from jax.experimental import pallas as pl
from jax.experimental.pallas import tpu as pltpu

BN_EPS = 1e-5


# -----------------------------------------------------------------------------
# small helpers
# -----------------------------------------------------------------------------

def _round_up(x, m):
    return (x + m - 1) // m * m


def _pick_tile(padded_dim, prefer):
    for t in prefer:
        if padded_dim % t == 0:
            return t
    return 128


def _pad2d(a, rows, cols):
    return jnp.pad(a, ((0, rows - a.shape[0]), (0, cols - a.shape[1])))


# -----------------------------------------------------------------------------
# Pallas kernels
# -----------------------------------------------------------------------------

def gemm_kernel(a_ref, b_ref, o_ref, acc_ref):
    """o = a @ b with K-axis reduction across grid axis 2 (bf16 in, f32 acc)."""
    @pl.when(pl.program_id(2) == 0)
    def _init():
        acc_ref[...] = jnp.zeros_like(acc_ref)

    acc_ref[...] += jnp.dot(a_ref[...], b_ref[...],
                            preferred_element_type=jnp.float32)

    @pl.when(pl.program_id(2) == pl.num_programs(2) - 1)
    def _store():
        o_ref[...] = acc_ref[...].astype(o_ref.dtype)


def gemm_add_kernel(a_ref, b_ref, r_ref, o_ref, acc_ref):
    """o = a @ b + r  (conv + residual add fused in the epilogue)."""
    @pl.when(pl.program_id(2) == 0)
    def _init():
        acc_ref[...] = jnp.zeros_like(acc_ref)

    acc_ref[...] += jnp.dot(a_ref[...], b_ref[...],
                            preferred_element_type=jnp.float32)

    @pl.when(pl.program_id(2) == pl.num_programs(2) - 1)
    def _store():
        o_ref[...] = (acc_ref[...] + r_ref[...]).astype(o_ref.dtype)


def bn_stats_kernel(x_ref, sum_ref, sq_ref, sum_acc, sq_acc):
    """Tile-safe per-channel sum / sum-of-squares reduction over the M grid axis."""
    @pl.when(pl.program_id(0) == 0)
    def _init():
        sum_acc[...] = jnp.zeros_like(sum_acc)
        sq_acc[...] = jnp.zeros_like(sq_acc)

    x = x_ref[...]
    sum_acc[...] += jnp.sum(x, axis=0, keepdims=True)
    sq_acc[...] += jnp.sum(x * x, axis=0, keepdims=True)

    @pl.when(pl.program_id(0) == pl.num_programs(0) - 1)
    def _fin():
        sum_ref[...] = sum_acc[...]
        sq_ref[...] = sq_acc[...]


def bn_apply_relu_kernel(x_ref, scale_ref, shift_ref, o_ref):
    """y = relu(x * scale + shift); f32 math, bf16 output for the MXU consumer."""
    y = x_ref[...] * scale_ref[...] + shift_ref[...]
    o_ref[...] = jnp.maximum(y, 0.0).astype(o_ref.dtype)


# -----------------------------------------------------------------------------
# Tiled GEMM wrapper (bf16 operands, f32 accumulate, lane-dense padded output)
# -----------------------------------------------------------------------------

def _tiled_gemm(a, b, r=None):
    """a: (Mp, Kp) bf16; b: (Kp, Np) bf16; r: (Mp, Np) f32 or None -> (Mp, Np) f32."""
    Mp, Kp = a.shape
    _, Np = b.shape
    tm = _pick_tile(Mp, (512, 256, 128))
    tn = _pick_tile(Np, (256, 128))
    tk = _pick_tile(Kp, (512, 256, 128))
    grid = (Mp // tm, Np // tn, Kp // tk)

    in_specs = [pl.BlockSpec((tm, tk), lambda i, j, k: (i, k)),
                pl.BlockSpec((tk, tn), lambda i, j, k: (k, j))]
    operands = [a, b]
    kernel = gemm_kernel
    bytes_accessed = a.size * 2 + b.size * 2 + Mp * Np * 4
    if r is not None:
        in_specs.append(pl.BlockSpec((tm, tn), lambda i, j, k: (i, j)))
        operands.append(r)
        kernel = gemm_add_kernel
        bytes_accessed += r.size * 4

    return pl.pallas_call(
        kernel,
        out_shape=jax.ShapeDtypeStruct((Mp, Np), jnp.float32),
        grid_spec=pltpu.PrefetchScalarGridSpec(
            num_scalar_prefetch=0,
            grid=grid,
            in_specs=in_specs,
            out_specs=pl.BlockSpec((tm, tn), lambda i, j, k: (i, j)),
            scratch_shapes=[pltpu.VMEM((tm, tn), jnp.float32)]),
        compiler_params=pltpu.CompilerParams(
            dimension_semantics=("parallel", "parallel", "arbitrary"),
            vmem_limit_bytes=32 * 1024 * 1024),
        cost_estimate=pl.CostEstimate(flops=2 * Mp * Np * Kp,
                                      transcendentals=0,
                                      bytes_accessed=int(bytes_accessed)),
    )(*operands)


# -----------------------------------------------------------------------------
# BatchNorm (training-mode batch stats) + ReLU: two-pass, tile-safe
# -----------------------------------------------------------------------------

def pallas_bn_relu(x2d, gamma, beta):
    """x2d: (M, C) f32; gamma/beta: (1, C) f32 -> (M, C) bf16 activation."""
    M, C = x2d.shape
    Cp = _round_up(C, 128)
    tm = _pick_tile(_round_up(M, 128), (512, 256, 128))
    Mp = _round_up(M, tm)
    xp = _pad2d(x2d, Mp, Cp)                       # zero rows/cols: harmless for sums
    gp = jnp.pad(gamma, ((0, 0), (0, Cp - C)))
    bp = jnp.pad(beta, ((0, 0), (0, Cp - C)))
    grid = (Mp // tm,)

    sums, sqs = pl.pallas_call(
        bn_stats_kernel,
        out_shape=(jax.ShapeDtypeStruct((1, Cp), jnp.float32),
                   jax.ShapeDtypeStruct((1, Cp), jnp.float32)),
        grid=grid,
        in_specs=[pl.BlockSpec((tm, Cp), lambda i: (i, 0))],
        out_specs=(pl.BlockSpec((1, Cp), lambda i: (0, 0)),
                   pl.BlockSpec((1, Cp), lambda i: (0, 0))),
        scratch_shapes=[pltpu.VMEM((1, Cp), jnp.float32),
                        pltpu.VMEM((1, Cp), jnp.float32)],
        compiler_params=pltpu.CompilerParams(
            dimension_semantics=("arbitrary",)),
    )(xp)

    mean = sums / M                                # true M: padded zero rows cancel
    var = sqs / M - mean * mean                    # biased var (PyTorch normalization)
    inv = jax.lax.rsqrt(var + BN_EPS)
    scale = gp * inv
    shift = bp - mean * scale

    act = pl.pallas_call(
        bn_apply_relu_kernel,
        out_shape=jax.ShapeDtypeStruct((Mp, Cp), jnp.bfloat16),
        grid=grid,
        in_specs=[pl.BlockSpec((tm, Cp), lambda i: (i, 0)),
                  pl.BlockSpec((1, Cp), lambda i: (0, 0)),
                  pl.BlockSpec((1, Cp), lambda i: (0, 0))],
        out_specs=pl.BlockSpec((tm, Cp), lambda i: (i, 0)),
        compiler_params=pltpu.CompilerParams(
            dimension_semantics=("parallel",)),
    )(xp, scale, shift)

    return act[:M, :C]


# -----------------------------------------------------------------------------
# Conv via im2col (glue) + tiled Pallas GEMM
# -----------------------------------------------------------------------------

def _im2col(x, ksize, stride, pad):
    """x: (N,H,W,C) -> patches (N*OH*OW, ksize*ksize*C), column order (kh,kw,cin)."""
    N, H, W, C = x.shape
    xp = jnp.pad(x, ((0, 0), (pad, pad), (pad, pad), (0, 0)))
    OH = (H + 2 * pad - ksize) // stride + 1
    OW = (W + 2 * pad - ksize) // stride + 1
    cols = []
    for kh in range(ksize):
        for kw in range(ksize):
            cols.append(xp[:, kh:kh + OH * stride:stride, kw:kw + OW * stride:stride, :])
    patches = jnp.concatenate(cols, axis=-1)
    return patches.reshape(N * OH * OW, ksize * ksize * C), (N, OH, OW)


def pallas_conv(act, w, stride, residual=None):
    """act: (N,H,W,Cin) bf16; w: (K,K,Cin,Cout) f32; residual: (N,OH,OW,Cout) f32."""
    k, _, cin, cout = w.shape
    pad = (k - 1) // 2
    patches, (n, oh, ow) = _im2col(act, k, stride, pad)   # bf16 (M, k*k*cin)
    M, K = patches.shape
    N = cout

    Kp = _round_up(K, 128)
    Np = _round_up(N, 128)
    tm = _pick_tile(_round_up(M, 128), (512, 256, 128))
    Mp = _round_up(M, tm)

    a = _pad2d(patches, Mp, Kp)
    b = _pad2d(w.reshape(K, N).astype(jnp.bfloat16), Kp, Np)
    r = None
    if residual is not None:
        r = _pad2d(residual.reshape(M, N).astype(jnp.float32), Mp, Np)

    out = _tiled_gemm(a, b, r)
    return out[:M, :N].reshape(n, oh, ow, N)


# -----------------------------------------------------------------------------
# BasicBlock / NetworkBlock (functional, forward path, ind=0)
# -----------------------------------------------------------------------------

def basic_block_forward(x, p):
    """WideResNet BasicBlock forward (drop_rate = 0).  x: (N,H,W,Cin) NHWC f32."""
    n, h, w_, cin = x.shape
    act1 = pallas_bn_relu(x.reshape(-1, cin),
                          p["bn1_gamma"], p["bn1_beta"]).reshape(n, h, w_, cin)

    out1 = pallas_conv(act1, p["conv1_w"], p["stride"])        # 3x3, stride, f32
    cout = out1.shape[-1]
    act2 = pallas_bn_relu(out1.reshape(-1, cout),
                          p["bn2_gamma"], p["bn2_beta"]).reshape(out1.shape)

    # TODO(synk): F.dropout omitted because drop_rate == 0.0 in this configuration.

    if p["equal_in_out"]:
        shortcut = x                                            # identity (raw input)
    else:
        shortcut = pallas_conv(act1, p["shortcut_w"], p["stride"])  # 1x1, stride

    return pallas_conv(act2, p["conv2_w"], 1, residual=shortcut)    # 3x3 + residual


def network_block_forward(x_nchw, layer_params):
    """NetworkBlock.forward with ind=0, step='forward', inter=False."""
    x = jnp.transpose(x_nchw, (0, 2, 3, 1))   # NCHW -> NHWC
    for p in layer_params:
        x = basic_block_forward(x, p)
    return jnp.transpose(x, (0, 3, 1, 2))     # NHWC -> NCHW


# -----------------------------------------------------------------------------
# Deterministic parameter construction (PyTorch-style init shapes)
# -----------------------------------------------------------------------------

def make_basic_block_params(key, in_planes, out_planes, stride):
    k1, k2, k3 = jax.random.split(key, 3)
    std3 = (2.0 / (3 * 3 * out_planes)) ** 0.5
    std1 = (2.0 / (1 * 1 * out_planes)) ** 0.5
    equal_in_out = (in_planes == out_planes)
    p = {
        "stride": stride,
        "equal_in_out": equal_in_out,
        "bn1_gamma": jnp.ones((1, in_planes), jnp.float32),
        "bn1_beta": jnp.zeros((1, in_planes), jnp.float32),
        "conv1_w": std3 * jax.random.normal(k1, (3, 3, in_planes, out_planes), jnp.float32),
        "bn2_gamma": jnp.ones((1, out_planes), jnp.float32),
        "bn2_beta": jnp.zeros((1, out_planes), jnp.float32),
        "conv2_w": std3 * jax.random.normal(k2, (3, 3, out_planes, out_planes), jnp.float32),
    }
    if not equal_in_out:
        p["shortcut_w"] = std1 * jax.random.normal(k3, (1, 1, in_planes, out_planes), jnp.float32)
    return p


def make_network_block_params(key, nb_layers, in_planes, out_planes, stride):
    keys = jax.random.split(key, nb_layers)
    params = []
    for i in range(nb_layers):
        params.append(
            make_basic_block_params(
                keys[i],
                in_planes if i == 0 else out_planes,
                out_planes,
                stride if i == 0 else 1,
            )
        )
    return params


# -----------------------------------------------------------------------------
# Pure-JAX f32 reference (correctness sanity check of the Pallas path)
# -----------------------------------------------------------------------------

def _ref_bn_relu(x2d, gamma, beta):
    mean = jnp.mean(x2d, axis=0, keepdims=True)
    var = jnp.mean((x2d - mean) ** 2, axis=0, keepdims=True)
    return jnp.maximum((x2d - mean) * jax.lax.rsqrt(var + BN_EPS) * gamma + beta, 0.0)


def _ref_conv(x, w, stride):
    pad = (w.shape[0] - 1) // 2
    return jax.lax.conv_general_dilated(
        x, w, window_strides=(stride, stride), padding=[(pad, pad), (pad, pad)],
        dimension_numbers=("NHWC", "HWIO", "NHWC"))


def _ref_block(x, p):
    act1 = _ref_bn_relu(x.reshape(-1, x.shape[-1]), p["bn1_gamma"], p["bn1_beta"]).reshape(x.shape)
    out = _ref_conv(act1, p["conv1_w"], p["stride"])
    act2 = _ref_bn_relu(out.reshape(-1, out.shape[-1]), p["bn2_gamma"], p["bn2_beta"]).reshape(out.shape)
    shortcut = x if p["equal_in_out"] else _ref_conv(act1, p["shortcut_w"], p["stride"])
    return _ref_conv(act2, p["conv2_w"], 1) + shortcut


def _ref_network_block(x_nchw, layer_params):
    x = jnp.transpose(x_nchw, (0, 2, 3, 1))
    for p in layer_params:
        x = _ref_block(x, p)
    return jnp.transpose(x, (0, 3, 1, 2))


# -----------------------------------------------------------------------------
if __name__ == "__main__":
    # NetworkBlock(nb_layers=2, in_planes=4, out_planes=8, block=BasicBlock,
    #              stride=2, drop_rate=0.0, ind=0, res_param=0.1)
    nb_layers, in_planes, out_planes, stride = 2, 4, 8, 2

    root = jax.random.PRNGKey(0)
    kx, kp = jax.random.split(root)
    x = jax.random.normal(kx, (2, in_planes, 16, 16), jnp.float32)  # NCHW like PyTorch
    params = make_network_block_params(kp, nb_layers, in_planes, out_planes, stride)

    out = jax.block_until_ready(network_block_forward(x, params))
    ref = jax.block_until_ready(_ref_network_block(x, params))

    assert out.shape == (2, out_planes, 8, 8), out.shape
    # bf16 MXU operands (f32 accumulation) -> loosened tolerance vs pure-f32 reference.
    assert jnp.allclose(out, ref, atol=1e-1, rtol=1e-1), float(jnp.max(jnp.abs(out - ref)))

    print("KERNEL_OK")
</pallas_src>

<mosaic_0001>
module attributes {stable_mosaic.version = 11 : i64} {
  func.func @bn_stats_kernel(%arg0: i32, %arg1: memref<512x128xf32, #tpu.memory_space<vmem>>, %arg2: memref<1x128xf32, #tpu.memory_space<vmem>>, %arg3: memref<1x128xf32, #tpu.memory_space<vmem>>, %arg4: memref<1x128xf32, #tpu.memory_space<vmem>>, %arg5: memref<1x128xf32, #tpu.memory_space<vmem>>) attributes {dimension_semantics = [#tpu.dimension_semantics<arbitrary>], iteration_bounds = array<i64: 1>, scalar_prefetch = 0 : i64, scratch_operands = 2 : i64, tpu.core_type = #tpu.core_type<tc>, window_params = [{transform_indices = @transform_0, window_bounds = array<i64: 512, 128>}, {pipeline_mode = #tpu.pipeline_mode<synchronous>, transform_indices = @transform_1, window_bounds = array<i64: 1, 128>}, {pipeline_mode = #tpu.pipeline_mode<synchronous>, transform_indices = @transform_2, window_bounds = array<i64: 1, 128>}]} {
    %c0_i32 = arith.constant 0 : i32
    %0 = arith.cmpi eq, %arg0, %c0_i32 : i32
    %1 = arith.extui %0 : i1 to i32
    %c0_i32_0 = arith.constant 0 : i32
    %2 = arith.cmpi ne, %1, %c0_i32_0 : i32
    scf.if %2 {
      %cst_13 = arith.constant 0.000000e+00 : f32
      %18 = vector.broadcast %cst_13 : f32 to vector<1x128xf32>
      %c0_14 = arith.constant 0 : index
      %c0_15 = arith.constant 0 : index
      %19 = vector.load %arg4[%c0_14, %c0_15] : memref<1x128xf32, #tpu.memory_space<vmem>>, vector<1x128xf32>
      tpu.vector_store %arg4[%c0_14, %c0_15], %18 {strides = array<i32>} : memref<1x128xf32, #tpu.memory_space<vmem>>, vector<1x128xf32>,
      %cst_16 = arith.constant 0.000000e+00 : f32
      %20 = vector.broadcast %cst_16 : f32 to vector<1x128xf32>
      %c0_17 = arith.constant 0 : index
      %c0_18 = arith.constant 0 : index
      %21 = vector.load %arg5[%c0_17, %c0_18] : memref<1x128xf32, #tpu.memory_space<vmem>>, vector<1x128xf32>
      tpu.vector_store %arg5[%c0_17, %c0_18], %20 {strides = array<i32>} : memref<1x128xf32, #tpu.memory_space<vmem>>, vector<1x128xf32>,
    } else {
    }
    %c0 = arith.constant 0 : index
    %c0_1 = arith.constant 0 : index
    %3 = vector.load %arg1[%c0, %c0_1] : memref<512x128xf32, #tpu.memory_space<vmem>>, vector<512x128xf32>
    %c0_2 = arith.constant 0 : index
    %c0_3 = arith.constant 0 : index
    %4 = vector.load %arg4[%c0_2, %c0_3] : memref<1x128xf32, #tpu.memory_space<vmem>>, vector<1x128xf32>
    %cst = arith.constant dense<0.000000e+00> : vector<128xf32>
    %5 = vector.multi_reduction <add>, %3, %cst [0] : vector<512x128xf32> to vector<128xf32>
    %6 = vector.shape_cast %5 : vector<128xf32> to vector<1x128xf32>
    %7 = arith.addf %4, %6 : vector<1x128xf32>
    %c0_4 = arith.constant 0 : index
    %c0_5 = arith.constant 0 : index
    %8 = vector.load %arg4[%c0_4, %c0_5] : memref<1x128xf32, #tpu.memory_space<vmem>>, vector<1x128xf32>
    tpu.vector_store %arg4[%c0_4, %c0_5], %7 {strides = array<i32>} : memref<1x128xf32, #tpu.memory_space<vmem>>, vector<1x128xf32>,
    %c0_6 = arith.constant 0 : index
    %c0_7 = arith.constant 0 : index
    %9 = vector.load %arg5[%c0_6, %c0_7] : memref<1x128xf32, #tpu.memory_space<vmem>>, vector<1x128xf32>
    %10 = arith.mulf %3, %3 : vector<512x128xf32>
    %cst_8 = arith.constant dense<0.000000e+00> : vector<128xf32>
    %11 = vector.multi_reduction <add>, %10, %cst_8 [0] : vector<512x128xf32> to vector<128xf32>
    %12 = vector.shape_cast %11 : vector<128xf32> to vector<1x128xf32>
    %13 = arith.addf %9, %12 : vector<1x128xf32>
    %c0_9 = arith.constant 0 : index
    %c0_10 = arith.constant 0 : index
    %14 = vector.load %arg5[%c0_9, %c0_10] : memref<1x128xf32, #tpu.memory_space<vmem>>, vector<1x128xf32>
    tpu.vector_store %arg5[%c0_9, %c0_10], %13 {strides = array<i32>} : memref<1x128xf32, #tpu.memory_space<vmem>>, vector<1x128xf32>,
    %c0_i32_11 = arith.constant 0 : i32
    %15 = arith.cmpi eq, %arg0, %c0_i32_11 : i32
    %16 = arith.extui %15 : i1 to i32
    %c0_i32_12 = arith.constant 0 : i32
    %17 = arith.cmpi ne, %16, %c0_i32_12 : i32
    scf.if %17 {
      %c0_13 = arith.constant 0 : index
      %c0_14 = arith.constant 0 : index
      %18 = vector.load %arg4[%c0_13, %c0_14] : memref<1x128xf32, #tpu.memory_space<vmem>>, vector<1x128xf32>
      %c0_15 = arith.constant 0 : index
      %c0_16 = arith.constant 0 : index
      %19 = vector.load %arg2[%c0_15, %c0_16] : memref<1x128xf32, #tpu.memory_space<vmem>>, vector<1x128xf32>
      tpu.vector_store %arg2[%c0_15, %c0_16], %18 {strides = array<i32>} : memref<1x128xf32, #tpu.memory_space<vmem>>, vector<1x128xf32>,
      %c0_17 = arith.constant 0 : index
      %c0_18 = arith.constant 0 : index
      %20 = vector.load %arg5[%c0_17, %c0_18] : memref<1x128xf32, #tpu.memory_space<vmem>>, vector<1x128xf32>
      %c0_19 = arith.constant 0 : index
      %c0_20 = arith.constant 0 : index
      %21 = vector.load %arg3[%c0_19, %c0_20] : memref<1x128xf32, #tpu.memory_space<vmem>>, vector<1x128xf32>
      tpu.vector_store %arg3[%c0_19, %c0_20], %20 {strides = array<i32>} : memref<1x128xf32, #tpu.memory_space<vmem>>, vector<1x128xf32>,
    } else {
    }
    return
  }
  func.func @transform_0(%arg0: i32) -> (i32, i32) {
    %c0_i32 = arith.constant 0 : i32
    %c0_i32_0 = arith.constant 0 : i32
    return %arg0, %c0_i32 : i32, i32
  }
  func.func @transform_1(%arg0: i32) -> (i32, i32) {
    %c0_i32 = arith.constant 0 : i32
    %c0_i32_0 = arith.constant 0 : i32
    %c0_i32_1 = arith.constant 0 : i32
    return %c0_i32, %c0_i32_0 : i32, i32
  }
  func.func @transform_2(%arg0: i32) -> (i32, i32) {
    %c0_i32 = arith.constant 0 : i32
    %c0_i32_0 = arith.constant 0 : i32
    %c0_i32_1 = arith.constant 0 : i32
    return %c0_i32, %c0_i32_0 : i32, i32
  }
}

</mosaic_0001>

<bundles_post_ra>
// kernel: tpu_custom_call.1
= control target key start
LH: loop header
LB: loop body
LE: loop exit
PB: predicated region body
PF: predicated region fallthrough
CT: control target
= control target key end

     0   :  { %8 = vsyncpa [#allocation5], 0  ;;  %s442_s0 = inlined_call_operand.hbm [shape: f32[512,128], index: 0, kind: input, shape index: {}]   ;;  %s443_s1 = inlined_call_operand.hbm [shape: f32[1,128], index: 1, kind: output, shape index: {0}]   ;;  %s444_s2 = inlined_call_operand.hbm [shape: f32[1,128], index: 2, kind: output, shape index: {1}]  }
   0x1   :  { %9 = vsyncpa [#allocation6], 0 }
   0x2   :  { %10 = vsyncpa [#allocation9], 0  ;;  %s412_s9 = smov [#allocation4]  }
   0x3   :  { %s16_s10 = sshll.u32 %s412_s9, 4  ;;  %s17_s10 = int_to_ptr.vmem [resolvable:$true] %s16_s10 }
   0x4   :  { %s354_s11 = scalar_lea.vmem %s17_s10, 8192  ;;  %p359_p1 = scmp.lt.s32.totalorder %s17_s10, %s17_s10 }
   0x5   :  { %p355_p0 = scmp.ne.s32.totalorder %s17_s10, %s354_s11  ;;  %p360_p2 = scmp.lt.s32.totalorder %s354_s11, %s354_s11 }
   0x7   :  { %p361_p3 = por %p360_p2, %p359_p1 }
   0x9   :  { %p362_p4 = pnand %p361_p3, %p355_p0 }
   0xb   :  { %365 = shalt.err (!%p362_p4)
}
   0xc   :  { %s413_s12 = smov 128   ;;  %s414_s13 = smov 8  }
   0xd   :  { %22 = dma.hbm_to_vmem [thread:$0]  %s442_s0, 8192, %s17_s10, [#allocation5], %s413_s12, %s413_s12, %s414_s13  }
   0xe   :  { %406 = dma.done.wait [#allocation5], 8192  }
   0xf   :  { %407 = vsyncadd [#allocation5], 4294959104  ;;  %v415_v0 = vmov 0.0   ;;  %v32_v1 = vld [vmem:[#allocation4] sm:$0xff]  ;;  %v33_v2 = vld [vmem:[#allocation4 + $0x8] sm:$0xff]  ;;  %s416_s0 = smov [#allocation7]  }
  0x10   :  { %30 = vst [vmem:[#allocation2] sm:$0x1] %v415_v0  ;;  %31 = vst [vmem:[#allocation3] sm:$0x1] %v415_v0  ;;  %v34_v3 = vld [vmem:[#allocation4 + $0x10] sm:$0xff]  ;;  %v35_v4 = vld [vmem:[#allocation4 + $0x18] sm:$0xff]  ;;  %v97_v5 = vadd.f32 %v33_v2, %v32_v1  ;;  %v169_v6 = vmul.f32 %v32_v1, %v32_v1  ;;  %v170_v7 = vmul.f32 %v33_v2, %v33_v2 }
  0x11   :  { %v171_v8 = vmul.f32 %v34_v3, %v34_v3  ;;  %v36_v9 = vld [vmem:[#allocation4 + $0x20] sm:$0xff]  ;;  %v172_v11 = vmul.f32 %v35_v4, %v35_v4  ;;  %v37_v13 = vld [vmem:[#allocation4 + $0x28] sm:$0xff]  ;;  %v38_v17 = vld [vmem:[#allocation4 + $0x30] sm:$0xff]  ;;  %s317_s16 = sshll.u32 %s416_s0, 4  ;;  %s417_s17 = smov [#allocation8]   ;;  %s318_s16 = int_to_ptr.vmem [resolvable:$true] %s317_s16 }
  0x12   :  { %v98_v10 = vadd.f32 %v97_v5, %v34_v3  ;;  %v233_v12 = vadd.f32 %v170_v7, %v169_v6  ;;  %v173_v15 = vmul.f32 %v36_v9, %v36_v9  ;;  %v174_v19 = vmul.f32 %v37_v13, %v37_v13  ;;  %v39_v21 = vld [vmem:[#allocation4 + $0x38] sm:$0xff]  ;;  %v40_v25 = vld [vmem:[#allocation4 + $0x40] sm:$0xff]  ;;  %v41_v29 = vld [vmem:[#allocation4 + $0x48] sm:$0xff]  ;;  %s327_s18 = sshll.u32 %s417_s17, 4  ;;  %s366_s19 = scalar_lea.vmem %s318_s16, 16  ;;  %s328_s18 = int_to_ptr.vmem [resolvable:$true] %s327_s18 }
  0x13   :  { %v175_v23 = vmul.f32 %v38_v17, %v38_v17  ;;  %v176_v27 = vmul.f32 %v39_v21, %v39_v21  ;;  %v177_v31 = vmul.f32 %v40_v25, %v40_v25  ;;  %v42_v33 = vld [vmem:[#allocation4 + $0x50] sm:$0xff]  ;;  %v178_v35 = vmul.f32 %v41_v29, %v41_v29  ;;  %v43_v37 = vld [vmem:[#allocation4 + $0x58] sm:$0xff]  ;;  %v44_v41 = vld [vmem:[#allocation4 + $0x60] sm:$0xff]  ;;  %p367_p5 = scmp.ne.s32.totalorder %s318_s16, %s366_s19  ;;  %s370_s20 = scalar_lea.vmem %s318_s16, 32 }
  0x14   :  { %v99_v14 = vadd.f32 %v98_v10, %v35_v4  ;;  %v234_v16 = vadd.f32 %v233_v12, %v171_v8  ;;  %v179_v39 = vmul.f32 %v42_v33, %v42_v33  ;;  %v180_v43 = vmul.f32 %v43_v37, %v43_v37  ;;  %v45_v45 = vld [vmem:[#allocation4 + $0x68] sm:$0xff]  ;;  %v46_v49 = vld [vmem:[#allocation4 + $0x70] sm:$0xff]  ;;  %v47_v53 = vld [vmem:[#allocation4 + $0x78] sm:$0xff]  ;;  %p371_p6 = scmp.lt.s32.totalorder %s318_s16, %s318_s16  ;;  %p372_p7 = scmp.lt.s32.totalorder %s370_s20, %s366_s19 }
  0x15   :  { %v181_v47 = vmul.f32 %v44_v41, %v44_v41  ;;  %v182_v51 = vmul.f32 %v45_v45, %v45_v45  ;;  %v183_v55 = vmul.f32 %v46_v49, %v46_v49  ;;  %v48_v57 = vld [vmem:[#allocation4 + $0x80] sm:$0xff]  ;;  %v184_v59 = vmul.f32 %v47_v53, %v47_v53  ;;  %v49_v61 = vld [vmem:[#allocation4 + $0x88] sm:$0xff]  ;;  %v50_v1 = vld [vmem:[#allocation4 + $0x90] sm:$0xff] }
  0x16   :  { %v100_v18 = vadd.f32 %v99_v14, %v36_v9  ;;  %v235_v20 = vadd.f32 %v234_v16, %v172_v11  ;;  %v185_v63 = vmul.f32 %v48_v57, %v48_v57  ;;  %v186_v3 = vmul.f32 %v49_v61, %v49_v61  ;;  %v51_v5 = vld [vmem:[#allocation4 + $0x98] sm:$0xff]  ;;  %v52_v9 = vld [vmem:[#allocation4 + $0xa0] sm:$0xff]  ;;  %p373_p8 = por %p372_p7, %p371_p6 }
  0x17   :  { %v187_v7 = vmul.f32 %v50_v1, %v50_v1  ;;  %v188_v11 = vmul.f32 %v51_v5, %v51_v5 }
  0x18   :  { %v101_v22 = vadd.f32 %v100_v18, %v37_v13  ;;  %v236_v24 = vadd.f32 %v235_v20, %v173_v15  ;;  %v53_v13 = vld [vmem:[#allocation4 + $0xa8] sm:$0xff]  ;;  %v189_v15 = vmul.f32 %v52_v9, %v52_v9  ;;  %p374_p9 = pnand %p373_p8, %p367_p5 }
  0x1a   :  { %v102_v26 = vadd.f32 %v101_v22, %v38_v17  ;;  %v237_v28 = vadd.f32 %v236_v24, %v174_v19  ;;  %v54_v17 = vld [vmem:[#allocation4 + $0xb0] sm:$0xff]  ;;  %v190_v19 = vmul.f32 %v53_v13, %v53_v13 }
  0x1c   :  { %v103_v30 = vadd.f32 %v102_v26, %v39_v21  ;;  %v238_v32 = vadd.f32 %v237_v28, %v175_v23  ;;  %v55_v21 = vld [vmem:[#allocation4 + $0xb8] sm:$0xff]  ;;  %v191_v23 = vmul.f32 %v54_v17, %v54_v17 }
  0x1e   :  { %v104_v34 = vadd.f32 %v103_v30, %v40_v25  ;;  %v239_v36 = vadd.f32 %v238_v32, %v176_v27  ;;  %v56_v25 = vld [vmem:[#allocation4 + $0xc0] sm:$0xff]  ;;  %v192_v27 = vmul.f32 %v55_v21, %v55_v21 }
  0x20   :  { %v105_v38 = vadd.f32 %v104_v34, %v41_v29  ;;  %v240_v40 = vadd.f32 %v239_v36, %v177_v31  ;;  %v57_v29 = vld [vmem:[#allocation4 + $0xc8] sm:$0xff]  ;;  %v193_v31 = vmul.f32 %v56_v25, %v56_v25 }
  0x22   :  { %v106_v42 = vadd.f32 %v105_v38, %v42_v33  ;;  %v241_v44 = vadd.f32 %v240_v40, %v178_v35  ;;  %v58_v33 = vld [vmem:[#allocation4 + $0xd0] sm:$0xff]  ;;  %v194_v35 = vmul.f32 %v57_v29, %v57_v29 }
  0x24   :  { %v107_v46 = vadd.f32 %v106_v42, %v43_v37  ;;  %v242_v48 = vadd.f32 %v241_v44, %v179_v39  ;;  %v59_v37 = vld [vmem:[#allocation4 + $0xd8] sm:$0xff]  ;;  %v195_v39 = vmul.f32 %v58_v33, %v58_v33 }
  0x26   :  { %v108_v50 = vadd.f32 %v107_v46, %v44_v41  ;;  %v243_v52 = vadd.f32 %v242_v48, %v180_v43  ;;  %v60_v41 = vld [vmem:[#allocation4 + $0xe0] sm:$0xff]  ;;  %v196_v43 = vmul.f32 %v59_v37, %v59_v37 }
  0x28   :  { %v109_v54 = vadd.f32 %v108_v50, %v45_v45  ;;  %v244_v56 = vadd.f32 %v243_v52, %v181_v47  ;;  %v61_v45 = vld [vmem:[#allocation4 + $0xe8] sm:$0xff]  ;;  %v197_v47 = vmul.f32 %v60_v41, %v60_v41 }
  0x2a   :  { %v110_v58 = vadd.f32 %v109_v54, %v46_v49  ;;  %v245_v60 = vadd.f32 %v244_v56, %v182_v51  ;;  %v62_v49 = vld [vmem:[#allocation4 + $0xf0] sm:$0xff]  ;;  %v198_v51 = vmul.f32 %v61_v45, %v61_v45 }
  0x2c   :  { %v111_v62 = vadd.f32 %v110_v58, %v47_v53  ;;  %v246_v0 = vadd.f32 %v245_v60, %v183_v55  ;;  %v63_v53 = vld [vmem:[#allocation4 + $0xf8] sm:$0xff]  ;;  %v199_v55 = vmul.f32 %v62_v49, %v62_v49 }
  0x2e   :  { %v112_v2 = vadd.f32 %v111_v62, %v48_v57  ;;  %v247_v4 = vadd.f32 %v246_v0, %v184_v59  ;;  %v64_v57 = vld [vmem:[#allocation4 + $0x100] sm:$0xff]  ;;  %v200_v59 = vmul.f32 %v63_v53, %v63_v53 }
  0x30   :  { %v113_v6 = vadd.f32 %v112_v2, %v49_v61  ;;  %v248_v8 = vadd.f32 %v247_v4, %v185_v63  ;;  %v65_v61 = vld [vmem:[#allocation4 + $0x108] sm:$0xff]  ;;  %v201_v63 = vmul.f32 %v64_v57, %v64_v57 }
  0x32   :  { %v114_v10 = vadd.f32 %v113_v6, %v50_v1  ;;  %v249_v12 = vadd.f32 %v248_v8, %v186_v3  ;;  %v66_v1 = vld [vmem:[#allocation4 + $0x110] sm:$0xff]  ;;  %v202_v3 = vmul.f32 %v65_v61, %v65_v61 }
  0x34   :  { %v115_v14 = vadd.f32 %v114_v10, %v51_v5  ;;  %v250_v16 = vadd.f32 %v249_v12, %v187_v7  ;;  %v67_v5 = vld [vmem:[#allocation4 + $0x118] sm:$0xff]  ;;  %v203_v7 = vmul.f32 %v66_v1, %v66_v1 }
  0x36   :  { %v116_v18 = vadd.f32 %v115_v14, %v52_v9  ;;  %v251_v20 = vadd.f32 %v250_v16, %v188_v11  ;;  %v68_v9 = vld [vmem:[#allocation4 + $0x120] sm:$0xff]  ;;  %v204_v11 = vmul.f32 %v67_v5, %v67_v5 }
  0x38   :  { %v117_v22 = vadd.f32 %v116_v18, %v53_v13  ;;  %v252_v24 = vadd.f32 %v251_v20, %v189_v15  ;;  %v69_v13 = vld [vmem:[#allocation4 + $0x128] sm:$0xff]  ;;  %v205_v15 = vmul.f32 %v68_v9, %v68_v9 }
  0x3a   :  { %v118_v26 = vadd.f32 %v117_v22, %v54_v17  ;;  %v253_v28 = vadd.f32 %v252_v24, %v190_v19  ;;  %v70_v17 = vld [vmem:[#allocation4 + $0x130] sm:$0xff]  ;;  %v206_v19 = vmul.f32 %v69_v13, %v69_v13 }
  0x3c   :  { %v119_v30 = vadd.f32 %v118_v26, %v55_v21  ;;  %v254_v32 = vadd.f32 %v253_v28, %v191_v23  ;;  %v71_v21 = vld [vmem:[#allocation4 + $0x138] sm:$0xff]  ;;  %v207_v23 = vmul.f32 %v70_v17, %v70_v17 }
  0x3e   :  { %v120_v34 = vadd.f32 %v119_v30, %v56_v25  ;;  %v255_v36 = vadd.f32 %v254_v32, %v192_v27  ;;  %v72_v25 = vld [vmem:[#allocation4 + $0x140] sm:$0xff]  ;;  %v208_v27 = vmul.f32 %v71_v21, %v71_v21 }
  0x40   :  { %v121_v38 = vadd.f32 %v120_v34, %v57_v29  ;;  %v256_v40 = vadd.f32 %v255_v36, %v193_v31  ;;  %v73_v29 = vld [vmem:[#allocation4 + $0x148] sm:$0xff]  ;;  %v209_v31 = vmul.f32 %v72_v25, %v72_v25 }
  0x42   :  { %v122_v42 = vadd.f32 %v121_v38, %v58_v33  ;;  %v257_v44 = vadd.f32 %v256_v40, %v194_v35  ;;  %v74_v33 = vld [vmem:[#allocation4 + $0x150] sm:$0xff]  ;;  %v210_v35 = vmul.f32 %v73_v29, %v73_v29 }
  0x44   :  { %v123_v46 = vadd.f32 %v122_v42, %v59_v37  ;;  %v258_v48 = vadd.f32 %v257_v44, %v195_v39  ;;  %v75_v37 = vld [vmem:[#allocation4 + $0x158] sm:$0xff]  ;;  %v211_v39 = vmul.f32 %v74_v33, %v74_v33 }
  0x46   :  { %v124_v50 = vadd.f32 %v123_v46, %v60_v41  ;;  %v259_v52 = vadd.f32 %v258_v48, %v196_v43  ;;  %v76_v41 = vld [vmem:[#allocation4 + $0x160] sm:$0xff]  ;;  %v212_v43 = vmul.f32 %v75_v37, %v75_v37 }
  0x48   :  { %v125_v54 = vadd.f32 %v124_v50, %v61_v45  ;;  %v260_v56 = vadd.f32 %v259_v52, %v197_v47  ;;  %v77_v45 = vld [vmem:[#allocation4 + $0x168] sm:$0xff]  ;;  %v213_v47 = vmul.f32 %v76_v41, %v76_v41 }
  0x4a   :  { %v126_v58 = vadd.f32 %v125_v54, %v62_v49  ;;  %v261_v60 = vadd.f32 %v260_v56, %v198_v51  ;;  %v78_v49 = vld [vmem:[#allocation4 + $0x170] sm:$0xff]  ;;  %v214_v51 = vmul.f32 %v77_v45, %v77_v45 }
  0x4c   :  { %v127_v62 = vadd.f32 %v126_v58, %v63_v53  ;;  %v262_v0 = vadd.f32 %v261_v60, %v199_v55  ;;  %v79_v53 = vld [vmem:[#allocation4 + $0x178] sm:$0xff]  ;;  %v215_v55 = vmul.f32 %v78_v49, %v78_v49 }
  0x4e   :  { %v128_v2 = vadd.f32 %v127_v62, %v64_v57  ;;  %v263_v4 = vadd.f32 %v262_v0, %v200_v59  ;;  %v80_v57 = vld [vmem:[#allocation4 + $0x180] sm:$0xff]  ;;  %v216_v59 = vmul.f32 %v79_v53, %v79_v53 }
  0x50   :  { %v129_v6 = vadd.f32 %v128_v2, %v65_v61  ;;  %v264_v8 = vadd.f32 %v263_v4, %v201_v63  ;;  %v81_v61 = vld [vmem:[#allocation4 + $0x188] sm:$0xff]  ;;  %v217_v63 = vmul.f32 %v80_v57, %v80_v57 }
  0x52   :  { %v130_v10 = vadd.f32 %v129_v6, %v66_v1  ;;  %v265_v12 = vadd.f32 %v264_v8, %v202_v3  ;;  %v82_v1 = vld [vmem:[#allocation4 + $0x190] sm:$0xff]  ;;  %v218_v3 = vmul.f32 %v81_v61, %v81_v61 }
  0x54   :  { %v131_v14 = vadd.f32 %v130_v10, %v67_v5  ;;  %v266_v16 = vadd.f32 %v265_v12, %v203_v7  ;;  %v83_v5 = vld [vmem:[#allocation4 + $0x198] sm:$0xff]  ;;  %v219_v7 = vmul.f32 %v82_v1, %v82_v1 }
  0x56   :  { %v132_v18 = vadd.f32 %v131_v14, %v68_v9  ;;  %v267_v20 = vadd.f32 %v266_v16, %v204_v11  ;;  %v84_v9 = vld [vmem:[#allocation4 + $0x1a0] sm:$0xff]  ;;  %v220_v11 = vmul.f32 %v83_v5, %v83_v5 }
  0x58   :  { %v133_v22 = vadd.f32 %v132_v18, %v69_v13  ;;  %v268_v24 = vadd.f32 %v267_v20, %v205_v15  ;;  %v85_v13 = vld [vmem:[#allocation4 + $0x1a8] sm:$0xff]  ;;  %v221_v15 = vmul.f32 %v84_v9, %v84_v9 }
  0x5a   :  { %v134_v26 = vadd.f32 %v133_v22, %v70_v17  ;;  %v269_v28 = vadd.f32 %v268_v24, %v206_v19  ;;  %v86_v17 = vld [vmem:[#allocation4 + $0x1b0] sm:$0xff]  ;;  %v222_v19 = vmul.f32 %v85_v13, %v85_v13 }
  0x5c   :  { %v135_v30 = vadd.f32 %v134_v26, %v71_v21  ;;  %v270_v32 = vadd.f32 %v269_v28, %v207_v23  ;;  %v87_v21 = vld [vmem:[#allocation4 + $0x1b8] sm:$0xff]  ;;  %v223_v23 = vmul.f32 %v86_v17, %v86_v17 }
  0x5e   :  { %v136_v34 = vadd.f32 %v135_v30, %v72_v25  ;;  %v271_v36 = vadd.f32 %v270_v32, %v208_v27  ;;  %v88_v25 = vld [vmem:[#allocation4 + $0x1c0] sm:$0xff]  ;;  %v224_v27 = vmul.f32 %v87_v21, %v87_v21 }
  0x60   :  { %v137_v38 = vadd.f32 %v136_v34, %v73_v29  ;;  %v272_v40 = vadd.f32 %v271_v36, %v209_v31  ;;  %v89_v29 = vld [vmem:[#allocation4 + $0x1c8] sm:$0xff]  ;;  %v225_v31 = vmul.f32 %v88_v25, %v88_v25 }
  0x62   :  { %v138_v42 = vadd.f32 %v137_v38, %v74_v33  ;;  %v273_v44 = vadd.f32 %v272_v40, %v210_v35  ;;  %v90_v33 = vld [vmem:[#allocation4 + $0x1d0] sm:$0xff]  ;;  %v226_v35 = vmul.f32 %v89_v29, %v89_v29 }
  0x64   :  { %v139_v46 = vadd.f32 %v138_v42, %v75_v37  ;;  %v274_v48 = vadd.f32 %v273_v44, %v211_v39  ;;  %v91_v37 = vld [vmem:[#allocation4 + $0x1d8] sm:$0xff]  ;;  %v227_v39 = vmul.f32 %v90_v33, %v90_v33 }
  0x66   :  { %v140_v50 = vadd.f32 %v139_v46, %v76_v41  ;;  %v275_v52 = vadd.f32 %v274_v48, %v212_v43  ;;  %v92_v41 = vld [vmem:[#allocation4 + $0x1e0] sm:$0xff]  ;;  %v228_v43 = vmul.f32 %v91_v37, %v91_v37 }
  0x68   :  { %v141_v54 = vadd.f32 %v140_v50, %v77_v45  ;;  %v276_v56 = vadd.f32 %v275_v52, %v213_v47  ;;  %v93_v45 = vld [vmem:[#allocation4 + $0x1e8] sm:$0xff]  ;;  %v229_v47 = vmul.f32 %v92_v41, %v92_v41 }
  0x6a   :  { %v142_v58 = vadd.f32 %v141_v54, %v78_v49  ;;  %v277_v60 = vadd.f32 %v276_v56, %v214_v51  ;;  %v94_v49 = vld [vmem:[#allocation4 + $0x1f0] sm:$0xff]  ;;  %v230_v51 = vmul.f32 %v93_v45, %v93_v45 }
  0x6c   :  { %v143_v62 = vadd.f32 %v142_v58, %v79_v53  ;;  %v278_v0 = vadd.f32 %v277_v60, %v215_v55  ;;  %v95_v53 = vld [vmem:[#allocation4 + $0x1f8] sm:$0xff]  ;;  %v231_v55 = vmul.f32 %v94_v49, %v94_v49 }
  0x6d   :  { %v232_v58 = vmul.f32 %v95_v53, %v95_v53 }
  0x6e   :  { %v144_v2 = vadd.f32 %v143_v62, %v80_v57  ;;  %v279_v4 = vadd.f32 %v278_v0, %v216_v59 }
  0x70   :  { %v145_v6 = vadd.f32 %v144_v2, %v81_v61  ;;  %v280_v8 = vadd.f32 %v279_v4, %v217_v63 }
  0x72   :  { %v146_v10 = vadd.f32 %v145_v6, %v82_v1  ;;  %v281_v12 = vadd.f32 %v280_v8, %v218_v3 }
  0x74   :  { %v147_v14 = vadd.f32 %v146_v10, %v83_v5  ;;  %v282_v16 = vadd.f32 %v281_v12, %v219_v7  ;;  %v96_v7 = vld [vmem:[#allocation2] sm:$0x1]  ;;  %v168_v12 = vld [vmem:[#allocation3] sm:$0x1] }
  0x76   :  { %v148_v18 = vadd.f32 %v147_v14, %v84_v9  ;;  %v283_v20 = vadd.f32 %v282_v16, %v220_v11 }
  0x78   :  { %v149_v22 = vadd.f32 %v148_v18, %v85_v13  ;;  %v284_v24 = vadd.f32 %v283_v20, %v221_v15 }
  0x7a   :  { %v150_v26 = vadd.f32 %v149_v22, %v86_v17  ;;  %v285_v28 = vadd.f32 %v284_v24, %v222_v19 }
  0x7c   :  { %v151_v30 = vadd.f32 %v150_v26, %v87_v21  ;;  %v286_v32 = vadd.f32 %v285_v28, %v223_v23 }
  0x7e   :  { %v152_v34 = vadd.f32 %v151_v30, %v88_v25  ;;  %v287_v36 = vadd.f32 %v286_v32, %v224_v27 }
  0x80   :  { %v153_v38 = vadd.f32 %v152_v34, %v89_v29  ;;  %v288_v40 = vadd.f32 %v287_v36, %v225_v31 }
  0x82   :  { %v154_v42 = vadd.f32 %v153_v38, %v90_v33  ;;  %v289_v44 = vadd.f32 %v288_v40, %v226_v35 }
  0x84   :  { %v155_v46 = vadd.f32 %v154_v42, %v91_v37  ;;  %v290_v48 = vadd.f32 %v289_v44, %v227_v39 }
  0x86   :  { %v156_v50 = vadd.f32 %v155_v46, %v92_v41  ;;  %v291_v52 = vadd.f32 %v290_v48, %v228_v43 }
  0x88   :  { %v157_v54 = vadd.f32 %v156_v50, %v93_v45  ;;  %v292_v56 = vadd.f32 %v291_v52, %v229_v47 }
  0x8a   :  { %v158_v57 = vadd.f32 %v157_v54, %v94_v49  ;;  %v293_v59 = vadd.f32 %v292_v56, %v230_v51 }
  0x8c   :  { %v159_v60 = vadd.f32 %v158_v57, %v95_v53  ;;  %v294_v61 = vadd.f32 %v293_v59, %v231_v55 }
  0x8e   :  { %v160_v62 = vrot.slane %v159_v60, 4  ;;  %v295_v63 = vadd.f32 %v294_v61, %v232_v58 }
  0x90   :  { %v161_v0 = vadd.f32 %v160_v62, %v159_v60  ;;  %v296_v1 = vrot.slane %v295_v63, 4 }
  0x92   :  { %v162_v2 = vrot.slane %v161_v0, 2  ;;  %v297_v3 = vadd.f32 %v296_v1, %v295_v63 }
  0x94   :  { %v163_v4 = vadd.f32 %v162_v2, %v161_v0  ;;  %v298_v5 = vrot.slane %v297_v3, 2 }
  0x96   :  { %v164_v6 = vrot.slane %v163_v4, 1  ;;  %v299_v8 = vadd.f32 %v298_v5, %v297_v3 }
  0x98   :  { %v165_v9 = vadd.f32 %v164_v6, %v163_v4  ;;  %v300_v10 = vrot.slane %v299_v8, 1 }
  0x9a   :  { %v166_v11 = vadd.f32 %v165_v9, %v96_v7  ;;  %v301_v13 = vadd.f32 %v300_v10, %v299_v8 }
  0x9c   :  { %167 = vst [vmem:[#allocation2] sm:$0x1] %v166_v11  ;;  %v302_v14 = vadd.f32 %v301_v13, %v168_v12 }
  0x9e   :  { %303 = vst [vmem:[#allocation3] sm:$0x1] %v302_v14 }
  0xa3   :  { %v307_v15 = vld [vmem:[#allocation2] sm:$0x1] }
  0xa4   :  { %308 = vst [vmem:[#allocation7] sm:$0x1] %v307_v15 }
  0xa5   :  { %377 = shalt.err (!%p374_p9)
}
  0xa6   :  { %320 = dma.vmem_to_hbm [thread:$0]  %s318_s16, 16, %s443_s1, [#allocation6]   ;;  %v309_v16 = vld [vmem:[#allocation3] sm:$0x1] }
  0xa7   :  { %310 = vst [vmem:[#allocation8] sm:$0x1] %v309_v16  ;;  %s386_s23 = scalar_lea.vmem %s328_s18, 16  ;;  %s390_s24 = scalar_lea.vmem %s328_s18, 32 }
  0xa8   :  { %p387_p10 = scmp.ne.s32.totalorder %s328_s18, %s386_s23  ;;  %p391_p11 = scmp.lt.s32.totalorder %s328_s18, %s328_s18 }
  0xa9   :  { %p392_p12 = scmp.lt.s32.totalorder %s390_s24, %s386_s23 }
  0xab   :  { %p393_p13 = por %p392_p12, %p391_p11 }
  0xad   :  { %p394_p0 = pnand %p393_p13, %p387_p10 }
  0xaf   :  { %397 = shalt.err (!%p394_p0)
}
  0xb0   :  { %330 = dma.vmem_to_hbm [thread:$0]  %s328_s18, 16, %s444_s2, [#allocation9]  }
  0xb1   :  { %408 = dma.done.wait [#allocation6], 16  }
  0xb2   :  { %409 = vsyncadd [#allocation6], 4294967280 }
  0xb3   :  { %410 = dma.done.wait [#allocation9], 16  }
  0xb4   :  { %411 = vsyncadd [#allocation9], 4294967280 }
  0xb5   :  { %337 = vsyncpa [#allocation5], 1 }
  0xb6   :  { %338 = vsyncpa [#allocation6], 1 }
  0xb7   :  { %339 = vsyncpa [#allocation9], 1 }

</bundles_post_ra>
